<compile_context>
chip_gen: v6e
topology: v6e:2x2x1
jax: 0.10.0
libtpu: 0.0.40
codegen_flags: <defaults>
</compile_context>

<pallas_src>
import numpy as np

import jax
import jax.numpy as jnp
from jax.experimental import pallas as pl
from jax.experimental.pallas import tpu as pltpu

_MM_DTYPE = jnp.bfloat16   # MXU input dtype for the one-hot matmuls


def _round_up(v, m):
    return ((v + m - 1) // m) * m


def _pack_edges_host(src_np, n_tile, e_tile, n_tiles, num_edges):
    """Sort edges by source node and pack each node tile's edge range into its
    own e_tile-aligned region of a flat buffer (last tile is an all-padding
    dummy).  Host-side, touches only edge_index (structural), O(E log E)."""
    order = np.argsort(src_np, kind="stable").astype(np.int64)
    src_sorted = src_np[order]
    bounds = np.searchsorted(
        src_sorted, np.arange(n_tiles + 1, dtype=np.int64) * n_tile)
    counts = (bounds[1:] - bounds[:-1]).astype(np.int64)        # edges per node tile
    tile_counts = (counts + e_tile - 1) // e_tile               # edge tiles per node tile
    tile_starts = np.zeros((n_tiles,), np.int64)
    if n_tiles > 1:
        tile_starts[1:] = np.cumsum(tile_counts)[:-1]
    total_real = int(tile_counts.sum())
    dummy_tile = total_real                                     # all-padding tile
    packed_len = (total_real + 1) * e_tile
    e_steps = max(1, int(tile_counts.max()) if n_tiles > 0 else 1)

    src_packed = np.full((packed_len,), -1, np.int32)           # -1 never matches
    gather = np.full((packed_len,), num_edges, np.int32)        # num_edges -> zero slot
    tile_map = np.full((n_tiles * e_steps,), dummy_tile, np.int32)
    for t in range(n_tiles):
        s, c = int(bounds[t]), int(counts[t])
        d = int(tile_starts[t]) * e_tile
        src_packed[d:d + c] = src_sorted[s:s + c]
        gather[d:d + c] = order[s:s + c]
        for j in range(int(tile_counts[t])):
            tile_map[t * e_steps + j] = int(tile_starts[t]) + j
    return src_packed, gather, tile_map, tile_counts.astype(np.int32), e_steps, packed_len


def _global_mean_pool_kernel(tile_map_ref, etile_count_ref,        # scalar prefetch (SMEM)
                             x_ref, batch_ref, src_ref, erhs_ref,  # tiled inputs (VMEM)
                             out_ref,                              # (g_pad, f_pad) accumulator
                             nacc_ref):                            # (n_tile, 2) VMEM scratch
    """Grid step = (node tile ni, edge step ei)."""
    ni = pl.program_id(0)
    ei = pl.program_id(1)
    last_e = pl.num_programs(1) - 1

    n_tile = x_ref.shape[0]
    e_tile = src_ref.shape[1]
    g_pad = out_ref.shape[0]

    # ---- init accumulators ---------------------------------------------------
    @pl.when(jnp.logical_and(ni == 0, ei == 0))
    def _():
        out_ref[...] = jnp.zeros_like(out_ref)

    @pl.when(ei == 0)
    def _():
        nacc_ref[...] = jnp.zeros_like(nacc_ref)

    # ---- scatter_mean partial sums: only this node tile's own edge tiles ------
    @pl.when(ei < etile_count_ref[ni])
    def _():
        # cheap per-step offset on the (1, e_tile) src row (not the full tile iota)
        rel = src_ref[...] - ni * n_tile                              # (1, e_tile) i32
        row_ids = jax.lax.broadcasted_iota(jnp.int32, (n_tile, e_tile), 0)
        hit = (row_ids == rel).astype(_MM_DTYPE)                      # exact 0/1
        # erhs columns: 0 -> edge_mask, 1 -> 1.0 for real edges (padding src=-1
        # never hits, so padding rows are irrelevant).
        nacc_ref[...] += jnp.dot(hit, erhs_ref[...],
                                 preferred_element_type=jnp.float32)  # (n_tile, 2)

    # ---- last edge step: finish node_mask and pool this node tile -------------
    @pl.when(ei == last_e)
    def _():
        node_sum = nacc_ref[:, 0:1]                                   # (n_tile, 1)
        node_cnt = nacc_ref[:, 1:2]                                   # (n_tile, 1)
        inv_cnt = pl.reciprocal(jnp.maximum(node_cnt, 1.0), approx=True)
        node_mask = node_sum * inv_cnt                                # 0 if no edges

        xm = (x_ref[...] * node_mask).astype(_MM_DTYPE)               # (n_tile, f_pad)
        # sel[g, n] = 1 iff node n belongs to graph g (padding nodes: batch=-1).
        graph_ids = jax.lax.broadcasted_iota(jnp.int32, (g_pad, n_tile), 0)
        sel = (graph_ids == batch_ref[...]).astype(_MM_DTYPE)
        out_ref[...] += jnp.dot(sel, xm, preferred_element_type=jnp.float32)


def global_mean_pool_pallas(x, batch, edge_index, edge_mask, batch_size,
                            *, n_tile=256, e_tile=1024):
    """GlobalMeanPool.forward.

    x: (N, F) float, batch: (N,) int graph id per node, edge_index: (2, E) int,
    edge_mask: (E,) float, batch_size: static int (required -- avoids the
    `batch[-1].item() + 1` device->host sync of the PyTorch module).
    Tile sizes must be multiples of 128.
    """
    if batch_size is None:
        raise ValueError("pass batch_size statically (avoids a device->host sync)")
    assert n_tile % 128 == 0 and e_tile % 128 == 0

    N, F = x.shape
    E = int(edge_mask.shape[0])
    G = int(batch_size)

    n_pad = _round_up(N, n_tile)
    n_tiles = n_pad // n_tile
    g_pad = max(8, _round_up(G, 8))
    f_pad = _round_up(F, 128)          # no fused count column any more

    # Host-side structural preprocessing (edge_index only; edge_mask / x / batch
    # values stay on device).  Sizes are data-dependent -> this wrapper is eager.
    src_np = np.asarray(edge_index)[0].astype(np.int64)
    (src_packed, gather, tile_map, etile_count_np, e_steps, packed_len) = \
        _pack_edges_host(src_np, n_tile, e_tile, n_tiles, E)

    # Device-side operand prep.
    x_p = jnp.zeros((n_pad, f_pad), jnp.float32).at[:N, :F].set(x.astype(jnp.float32))
    batch_p = jnp.full((1, n_pad), -1, jnp.int32).at[0, :N].set(batch.astype(jnp.int32))
    src_p = jnp.asarray(src_packed).reshape(1, packed_len)

    gather_j = jnp.asarray(gather)                                   # (packed_len,)
    mask_padded = jnp.concatenate([edge_mask.astype(jnp.float32),
                                   jnp.zeros((1,), jnp.float32)])    # index E -> 0
    mask_col = mask_padded[gather_j]
    ones_col = (gather_j != E).astype(jnp.float32)
    erhs = jnp.stack([mask_col, ones_col], axis=1).astype(_MM_DTYPE)  # (packed_len, 2)

    tile_map_j = jnp.asarray(tile_map)           # (n_tiles*e_steps,) packed edge-tile index
    etile_count_j = jnp.asarray(etile_count_np)  # (n_tiles,) edge tiles per node tile

    grid = (n_tiles, e_steps)
    itemsize = jnp.dtype(_MM_DTYPE).itemsize
    flops = 2 * packed_len * n_tile * 2 + 2 * n_tiles * g_pad * n_tile * f_pad
    bytes_accessed = (4 * n_pad * f_pad + 4 * n_pad + 4 * g_pad * f_pad
                      + packed_len * (4 + 2 * itemsize))

    out = pl.pallas_call(
        _global_mean_pool_kernel,
        out_shape=jax.ShapeDtypeStruct((g_pad, f_pad), jnp.float32),
        grid_spec=pltpu.PrefetchScalarGridSpec(
            num_scalar_prefetch=2,
            grid=grid,
            in_specs=[
                # x / batch: constant block index along the edge axis -> fetched
                # once per node tile.
                pl.BlockSpec((n_tile, f_pad), lambda ni, ei, tm, tc: (ni, 0)),
                pl.BlockSpec((1, n_tile), lambda ni, ei, tm, tc: (0, ni)),
                # edge data: data-dependent tile index via the prefetched map.
                pl.BlockSpec((1, e_tile),
                             lambda ni, ei, tm, tc: (0, tm[ni * e_steps + ei])),
                pl.BlockSpec((e_tile, 2),
                             lambda ni, ei, tm, tc: (tm[ni * e_steps + ei], 0)),
            ],
            out_specs=pl.BlockSpec((g_pad, f_pad), lambda ni, ei, tm, tc: (0, 0)),
            scratch_shapes=[pltpu.VMEM((n_tile, 2), jnp.float32)],   # [node_sum | node_cnt]
        ),
        compiler_params=pltpu.CompilerParams(
            # output block is revisited along both grid axes (reductions)
            dimension_semantics=("arbitrary", "arbitrary"),
            vmem_limit_bytes=32 * 1024 * 1024,
        ),
        cost_estimate=pl.CostEstimate(
            flops=flops, transcendentals=n_pad, bytes_accessed=bytes_accessed),
    )(tile_map_j, etile_count_j, x_p, batch_p, src_p, erhs)

    # Exact final per-graph mean (once per call; done in XLA, not in-kernel).
    graph_counts = jnp.zeros((G,), jnp.float32).at[batch.astype(jnp.int32)].add(1.0)
    return out[:G, :F] / jnp.maximum(graph_counts, 1.0)[:, None]


def _reference(x, batch, edge_index, edge_mask, batch_size):
    # Pure-JAX f32 reference of the PyTorch forward.
    N, F = x.shape
    src = edge_index[0]
    node_sum = jnp.zeros((N,), jnp.float32).at[src].add(edge_mask)
    node_cnt = jnp.zeros((N,), jnp.float32).at[src].add(1.0)
    node_mask = jnp.where(node_cnt > 0, node_sum / jnp.maximum(node_cnt, 1.0), 0.0)
    xm = x * node_mask[:, None]
    pooled = jnp.zeros((batch_size, F), jnp.float32).at[batch].add(xm)
    counts = jnp.zeros((batch_size,), jnp.float32).at[batch].add(1.0)
    return pooled / jnp.maximum(counts, 1.0)[:, None]


if __name__ == "__main__":
    key = jax.random.PRNGKey(0)
    k1, k2, k3, k4 = jax.random.split(key, 4)

    # Small (but multi-tile) graph batch: 3 graphs, 200 nodes, 32 features, 300 edges.
    N, F, E, G = 200, 32, 300, 3
    x = jax.random.normal(k1, (N, F), dtype=jnp.float32)
    # Sorted batch vector (PyG contract): graph sizes 70 / 70 / 60.
    batch = jnp.concatenate([
        jnp.full((70,), 0, jnp.int32),
        jnp.full((70,), 1, jnp.int32),
        jnp.full((60,), 2, jnp.int32),
    ])
    edge_src = jax.random.randint(k2, (E,), 0, N, dtype=jnp.int32)
    edge_dst = jax.random.randint(k3, (E,), 0, N, dtype=jnp.int32)
    edge_index = jnp.stack([edge_src, edge_dst], axis=0)
    edge_mask = jax.random.uniform(k4, (E,), dtype=jnp.float32)

    # Small tiles so the demo exercises several grid steps on both axes
    # (defaults of 256/1024 are better at real sizes).
    out = global_mean_pool_pallas(x, batch, edge_index, edge_mask, batch_size=G,
                                  n_tile=128, e_tile=128)
    out = jax.block_until_ready(out)

    ref = _reference(x, batch, edge_index, edge_mask, G)
    assert out.shape == (G, F)
    # bf16 MXU inputs + approx node_mask reciprocal -> looser tolerance than pure f32.
    assert jnp.allclose(out, ref, atol=5e-2, rtol=5e-2), (
        f"mismatch vs reference: max abs err {jnp.max(jnp.abs(out - ref))}")
    print("KERNEL_OK")
</pallas_src>

<mosaic_0001>
module attributes {stable_mosaic.version = 11 : i64} {
  func.func @_global_mean_pool_kernel(%arg0: i32, %arg1: i32, %arg2: memref<4xi32, #tpu.memory_space<smem>>, %arg3: memref<2xi32, #tpu.memory_space<smem>>, %arg4: memref<128x128xf32, #tpu.memory_space<vmem>>, %arg5: memref<1x128xi32, #tpu.memory_space<vmem>>, %arg6: memref<1x128xi32, #tpu.memory_space<vmem>>, %arg7: memref<128x2xbf16, #tpu.memory_space<vmem>>, %arg8: memref<8x128xf32, #tpu.memory_space<vmem>>, %arg9: memref<128x2xf32, #tpu.memory_space<vmem>>) attributes {dimension_semantics = [#tpu.dimension_semantics<arbitrary>, #tpu.dimension_semantics<arbitrary>], iteration_bounds = array<i64: 2, 2>, scalar_prefetch = 2 : i64, scratch_operands = 1 : i64, tpu.core_type = #tpu.core_type<tc>, window_params = [{transform_indices = @transform_0, window_bounds = array<i64: 128, 128>}, {transform_indices = @transform_1, window_bounds = array<i64: 1, 128>}, {transform_indices = @transform_2, window_bounds = array<i64: 1, 128>}, {transform_indices = @transform_3, window_bounds = array<i64: 128, 2>}, {pipeline_mode = #tpu.pipeline_mode<synchronous>, transform_indices = @transform_4, window_bounds = array<i64: 8, 128>}]} {
    %c0_i32 = arith.constant 0 : i32
    %0 = arith.cmpi eq, %arg0, %c0_i32 : i32
    %c0_i32_0 = arith.constant 0 : i32
    %1 = arith.cmpi eq, %arg1, %c0_i32_0 : i32
    %2 = arith.andi %0, %1 : i1
    %3 = arith.extui %2 : i1 to i32
    %c0_i32_1 = arith.constant 0 : i32
    %4 = arith.cmpi ne, %3, %c0_i32_1 : i32
    scf.if %4 {
      %cst = arith.constant 0.000000e+00 : f32
      %16 = vector.broadcast %cst : f32 to vector<8x128xf32>
      %c0 = arith.constant 0 : index
      %c0_6 = arith.constant 0 : index
      %17 = vector.load %arg8[%c0, %c0_6] : memref<8x128xf32, #tpu.memory_space<vmem>>, vector<8x128xf32>
      tpu.vector_store %arg8[%c0, %c0_6], %16 {strides = array<i32>} : memref<8x128xf32, #tpu.memory_space<vmem>>, vector<8x128xf32>,
    } else {
    }
    %c0_i32_2 = arith.constant 0 : i32
    %5 = arith.cmpi eq, %arg1, %c0_i32_2 : i32
    %6 = arith.extui %5 : i1 to i32
    %c0_i32_3 = arith.constant 0 : i32
    %7 = arith.cmpi ne, %6, %c0_i32_3 : i32
    scf.if %7 {
      %cst = arith.constant 0.000000e+00 : f32
      %16 = vector.broadcast %cst : f32 to vector<128x2xf32>
      %c0 = arith.constant 0 : index
      %c0_6 = arith.constant 0 : index
      %17 = vector.load %arg9[%c0, %c0_6] : memref<128x2xf32, #tpu.memory_space<vmem>>, vector<128x2xf32>
      tpu.vector_store %arg9[%c0, %c0_6], %16 {strides = array<i32>} : memref<128x2xf32, #tpu.memory_space<vmem>>, vector<128x2xf32>,
    } else {
    }
    %8 = arith.index_cast %arg0 : i32 to index
    %9 = memref.load %arg3[%8] : memref<2xi32, #tpu.memory_space<smem>>
    %10 = arith.cmpi slt, %arg1, %9 : i32
    %11 = arith.extui %10 : i1 to i32
    %c0_i32_4 = arith.constant 0 : i32
    %12 = arith.cmpi ne, %11, %c0_i32_4 : i32
    scf.if %12 {
      %c0 = arith.constant 0 : index
      %c0_6 = arith.constant 0 : index
      %16 = vector.load %arg6[%c0, %c0_6] : memref<1x128xi32, #tpu.memory_space<vmem>>, vector<1x128xi32>
      %c128_i32 = arith.constant 128 : i32
      %17 = arith.muli %arg0, %c128_i32 : i32
      %18 = vector.broadcast %17 : i32 to vector<1x128xi32>
      %19 = arith.subi %16, %18 : vector<1x128xi32>
      %20 = tpu.iota {dimensions = array<i32: 0>} : vector<128x128xi32>
      %21 = vector.broadcast %19 : vector<1x128xi32> to vector<128x128xi32>
      %22 = arith.cmpi eq, %20, %21 : vector<128x128xi32>
      %23 = arith.extui %22 : vector<128x128xi1> to vector<128x128xi32>
      %24 = arith.sitofp %23 : vector<128x128xi32> to vector<128x128xf32>
      %25 = arith.truncf %24 : vector<128x128xf32> to vector<128x128xbf16>
      %c0_7 = arith.constant 0 : index
      %c0_8 = arith.constant 0 : index
      %26 = vector.load %arg9[%c0_7, %c0_8] : memref<128x2xf32, #tpu.memory_space<vmem>>, vector<128x2xf32>
      %c0_9 = arith.constant 0 : index
      %c0_10 = arith.constant 0 : index
      %27 = vector.load %arg7[%c0_9, %c0_10] : memref<128x2xbf16, #tpu.memory_space<vmem>>, vector<128x2xbf16>
      %cst = arith.constant dense<0.000000e+00> : vector<128x2xf32>
      %28 = tpu.matmul %25, %27, %cst {dimension_numbers = #tpu.dot_dimension_numbers<[1], [0], [0], [1], [0, 0, 1, 1], [], []>} : vector<128x128xbf16>, vector<128x2xbf16>, vector<128x2xf32> -> vector<128x2xf32>
      %29 = arith.addf %26, %28 : vector<128x2xf32>
      %c0_11 = arith.constant 0 : index
      %c0_12 = arith.constant 0 : index
      %30 = vector.load %arg9[%c0_11, %c0_12] : memref<128x2xf32, #tpu.memory_space<vmem>>, vector<128x2xf32>
      tpu.vector_store %arg9[%c0_11, %c0_12], %29 {strides = array<i32>} : memref<128x2xf32, #tpu.memory_space<vmem>>, vector<128x2xf32>,
    } else {
    }
    %c1_i32 = arith.constant 1 : i32
    %13 = arith.cmpi eq, %arg1, %c1_i32 : i32
    %14 = arith.extui %13 : i1 to i32
    %c0_i32_5 = arith.constant 0 : i32
    %15 = arith.cmpi ne, %14, %c0_i32_5 : i32
    scf.if %15 {
      %c0 = arith.constant 0 : index
      %c0_6 = arith.constant 0 : index
      %16 = vector.load %arg9[%c0, %c0_6] : memref<128x2xf32, #tpu.memory_space<vmem>>, vector<128x1xf32>
      %c0_7 = arith.constant 0 : index
      %c1 = arith.constant 1 : index
      %17 = vector.load %arg9[%c0_7, %c1] : memref<128x2xf32, #tpu.memory_space<vmem>>, vector<128x1xf32>
      %cst = arith.constant 1.000000e+00 : f32
      %18 = vector.broadcast %cst : f32 to vector<128x1xf32>
      %19 = arith.maximumf %17, %18 : vector<128x1xf32>
      %20 = tpu.reciprocal %19 {approx = true} : vector<128x1xf32> -> vector<128x1xf32>
      %21 = arith.mulf %16, %20 : vector<128x1xf32>
      %c0_8 = arith.constant 0 : index
      %c0_9 = arith.constant 0 : index
      %22 = vector.load %arg4[%c0_8, %c0_9] : memref<128x128xf32, #tpu.memory_space<vmem>>, vector<128x128xf32>
      %23 = vector.broadcast %21 : vector<128x1xf32> to vector<128x128xf32>
      %24 = arith.mulf %22, %23 : vector<128x128xf32>
      %25 = arith.truncf %24 : vector<128x128xf32> to vector<128x128xbf16>
      %26 = tpu.iota {dimensions = array<i32: 0>} : vector<8x128xi32>
      %c0_10 = arith.constant 0 : index
      %c0_11 = arith.constant 0 : index
      %27 = vector.load %arg5[%c0_10, %c0_11] : memref<1x128xi32, #tpu.memory_space<vmem>>, vector<1x128xi32>
      %28 = vector.broadcast %27 : vector<1x128xi32> to vector<8x128xi32>
      %29 = arith.cmpi eq, %26, %28 : vector<8x128xi32>
      %30 = arith.extui %29 : vector<8x128xi1> to vector<8x128xi32>
      %31 = arith.sitofp %30 : vector<8x128xi32> to vector<8x128xf32>
      %32 = arith.truncf %31 : vector<8x128xf32> to vector<8x128xbf16>
      %c0_12 = arith.constant 0 : index
      %c0_13 = arith.constant 0 : index
      %33 = vector.load %arg8[%c0_12, %c0_13] : memref<8x128xf32, #tpu.memory_space<vmem>>, vector<8x128xf32>
      %cst_14 = arith.constant dense<0.000000e+00> : vector<8x128xf32>
      %34 = tpu.matmul %32, %25, %cst_14 {dimension_numbers = #tpu.dot_dimension_numbers<[1], [0], [0], [1], [0, 0, 1, 1], [], []>} : vector<8x128xbf16>, vector<128x128xbf16>, vector<8x128xf32> -> vector<8x128xf32>
      %35 = arith.addf %33, %34 : vector<8x128xf32>
      %c0_15 = arith.constant 0 : index
      %c0_16 = arith.constant 0 : index
      %36 = vector.load %arg8[%c0_15, %c0_16] : memref<8x128xf32, #tpu.memory_space<vmem>>, vector<8x128xf32>
      tpu.vector_store %arg8[%c0_15, %c0_16], %35 {strides = array<i32>} : memref<8x128xf32, #tpu.memory_space<vmem>>, vector<8x128xf32>,
    } else {
    }
    return
  }
  func.func @transform_0(%arg0: i32, %arg1: i32, %arg2: memref<4xi32, #tpu.memory_space<smem>>, %arg3: memref<2xi32, #tpu.memory_space<smem>>) -> (i32, i32) {
    %c0_i32 = arith.constant 0 : i32
    %c0_i32_0 = arith.constant 0 : i32
    return %arg0, %c0_i32 : i32, i32
  }
  func.func @transform_1(%arg0: i32, %arg1: i32, %arg2: memref<4xi32, #tpu.memory_space<smem>>, %arg3: memref<2xi32, #tpu.memory_space<smem>>) -> (i32, i32) {
    %c0_i32 = arith.constant 0 : i32
    %c0_i32_0 = arith.constant 0 : i32
    return %c0_i32, %arg0 : i32, i32
  }
  func.func @transform_2(%arg0: i32, %arg1: i32, %arg2: memref<4xi32, #tpu.memory_space<smem>>, %arg3: memref<2xi32, #tpu.memory_space<smem>>) -> (i32, i32) {
    %c2_i32 = arith.constant 2 : i32
    %0 = arith.muli %arg0, %c2_i32 : i32
    %1 = arith.addi %0, %arg1 : i32
    %2 = arith.index_cast %1 : i32 to index
    %3 = memref.load %arg2[%2] : memref<4xi32, #tpu.memory_space<smem>>
    %c0_i32 = arith.constant 0 : i32
    %c0_i32_0 = arith.constant 0 : i32
    return %c0_i32, %3 : i32, i32
  }
  func.func @transform_3(%arg0: i32, %arg1: i32, %arg2: memref<4xi32, #tpu.memory_space<smem>>, %arg3: memref<2xi32, #tpu.memory_space<smem>>) -> (i32, i32) {
    %c2_i32 = arith.constant 2 : i32
    %0 = arith.muli %arg0, %c2_i32 : i32
    %1 = arith.addi %0, %arg1 : i32
    %2 = arith.index_cast %1 : i32 to index
    %3 = memref.load %arg2[%2] : memref<4xi32, #tpu.memory_space<smem>>
    %c0_i32 = arith.constant 0 : i32
    %c0_i32_0 = arith.constant 0 : i32
    return %3, %c0_i32 : i32, i32
  }
  func.func @transform_4(%arg0: i32, %arg1: i32, %arg2: memref<4xi32, #tpu.memory_space<smem>>, %arg3: memref<2xi32, #tpu.memory_space<smem>>) -> (i32, i32) {
    %c0_i32 = arith.constant 0 : i32
    %c0_i32_0 = arith.constant 0 : i32
    %c0_i32_1 = arith.constant 0 : i32
    return %c0_i32, %c0_i32_0 : i32, i32
  }
}

</mosaic_0001>

<bundles_post_ra>
// kernel: tpu_custom_call.1
= control target key start
LH: loop header
LB: loop body
LE: loop exit
PB: predicated region body
PF: predicated region fallthrough
CT: control target
= control target key end

     0   :  { %s1711_s0 = inlined_call_operand.vmem [shape: s32[4], index: 0, kind: input, shape index: {}]   ;;  %s1712_s2 = inlined_call_operand.vmem [shape: f32[256,128], index: 2, kind: input, shape index: {}]   ;;  %s1713_s3 = inlined_call_operand.vmem [shape: s32[1,256], index: 3, kind: input, shape index: {}]   ;;  %s1714_s4 = inlined_call_operand.vmem [shape: s32[1,512], index: 4, kind: input, shape index: {}]   ;;  %s1715_s5 = inlined_call_operand.vmem [shape: bf16[512,2], index: 5, kind: input, shape index: {}]   ;;  %s1716_s6 = inlined_call_operand.hbm [shape: f32[8,128], index: 6, kind: output, shape index: {}]   ;;  %s1717_s1 = inlined_call_operand.hbm [shape: s32[2], index: 1, kind: input, shape index: {}]  }
   0x1   :  { %s11_s23 = sshll.u32 %s1711_s0, 4  ;;  %s12_s23 = int_to_ptr.vmem [resolvable:$true] %s11_s23 }
   0x2   :  { %s1276_s24 = scalar_lea.vmem %s12_s23, 16  ;;  %p1281_p1 = scmp.lt.s32.totalorder %s12_s23, %s12_s23 }
   0x3   :  { %p1277_p0 = scmp.ne.s32.totalorder %s12_s23, %s1276_s24  ;;  %p1282_p2 = scmp.lt.s32.totalorder %s1276_s24, %s1276_s24 }
   0x5   :  { %p1283_p3 = por %p1282_p2, %p1281_p1 }
   0x7   :  { %p1284_p4 = pnand %p1283_p3, %p1277_p0 }
   0x9   :  { %1287 = shalt.err (!%p1284_p4)  }
   0xa   :  { %s1366_s25 = smov [#allocation4]   ;;  %s1367_s26 = smov [#allocation5]  }
   0xb   :  { %14 = dma.vmem_to_smem %s12_s23, 16, %s1366_s25, [#allocation3] }
   0xc   :  { %16 = dma.hbm_to_smem %s1717_s1, 16, %s1367_s26, [#allocation3] }
   0xd   :  { %1340 = dma.done.wait [#allocation3], 32 }
   0xe   :  { %1341 = vsyncadd [#allocation3], 4294967264 }
   0xf   :  { %18 = sfence }
  0x10   :  { %19 = vsyncpa [#allocation7], 0  ;;  %s1418_s0 = smov 0   ;;  %s1420_s29 = smov 0  }
  0x11   :  { %s1422_s30 = smov 0   ;;  %s1424_s7 = smov 0  }
  0x12   :  { %s1426_s8 = smov 0  }
  0x13 LB: > { %s1018_s1 = sadd.s32 4294967295, %s1364_s8   ;;  %s34_s9 = sadd.s32 1, %s1356_s30  ;;  %s1364_s8 = sphi %s1426_s8, %s25_s8   ;;  %s1360_s7 = sphi %s1424_s7, %s1722_s7   ;;  %s1356_s30 = sphi %s1422_s30, %s1721_s30   ;;  %s1352_s29 = sphi %s1420_s29, %s1720_s29   ;;  %s1348_s0 = sphi %s1418_s0, %s1719_s0  }
  0x14   : > { %p35_p5 = scmp.ge.s32.totalorder %s34_s9, 2  ;;  %s37_s10 = sadd.s32 1, %s1360_s7 }
  0x15   : > { %p1025_p6 = scmp.ge.s32.totalorder %s1364_s8, 1  ;;  %p232_p7 = scmp.lt.s32.totalorder %s1364_s8, 5 }
  0x16   : > { %s1724_s9 = smov (%p35_p5, %s34_s9), 0  ;;  %s1726_s10 = smov (!%p35_p5, %s37_s10), %s1360_s7 }
  0x17   : > { %p233_p8 = pnand %p1025_p6, %p232_p7  ;;  %p39_p9 = scmp.ge.s32.totalorder %s1726_s10, 2 }
  0x18   : > { %s1026_s11 = sshll.u32 (!%p233_p8), %s1352_s29, 4  ;;  %p276_p10 = scmp.lt.s32.totalorder (!%p233_p8), %s1352_s29, 1 }
  0x19   : > { %s1728_s10 = smov (%p39_p9, %s1726_s10), 0  ;;  %236 = sbr.rel (%p233_p8) target bundleno = 834 (0x342), region = 36 }
  0x1a   : > { %p271_p11 = scmp.lt.s32.totalorder (!%p233_p8), %s1026_s11, 31  ;;  %s1028_s12 = sshll.u32 (!%p233_p8), %s1352_s29, 1 }
  0x1b   : > { %s280_s17 = sadd.s32 (!%p233_p8), %s1348_s0, %s1028_s12  ;;  %p301_p12 = scmp.eq.s32.totalorder (!%p233_p8), %s1352_s29, 0 }
  0x1c   : > { %s281_s19 = sld [smem:[#allocation4 + %s280_s17]] (!%p233_p8)  ;;  %p302_p13 = scmp.eq.s32.totalorder (!%p233_p8), %s1348_s0, 0 }
  0x1d   : > { %s290_s23 = sld [smem:[#allocation4 + %s280_s17]] (!%p233_p8) }
  0x1e   : > { %s1457_s13 = scalar_select %p276_p10, %s1352_s29, 1 }
  0x1f   : > { %s1730_s11 = smov (!%p271_p11, %s1026_s11), 31  ;;  %p303_p0 = pnand %p302_p13, %p301_p12 }
  0x20   : > { %s278_s16 = scalar_lea.vmem %s1713_s3, %s1457_s13  ;;  %s1027_s18 = sshll.u32 %s1730_s11, 3 }
  0x21   : > { %s1467_s22 = scalar_lea.vmem %s1712_s2, %s1027_s18 }
  0x22   : > { %p282_p1 = scmp.lt.s32.totalorder %s281_s19, 3 }
  0x23   : > { %s1030_s24 = sshll.u32 %s290_s23, 4 }
  0x24   : > { %s1732_s19 = smov (!%p282_p1, %s281_s19), 3  ;;  %p292_p2 = scmp.lt.s32.totalorder %s1030_s24, 63 }
  0x25   : > { %s284_s27 = scalar_lea.vmem %s1714_s4, %s1732_s19  ;;  %306 = sbr.rel (%p303_p0) target bundleno = 44 (0x2c), region = 40 }
  0x26   : > { %s1734_s24 = smov (!%p292_p2, %s1030_s24), 63 }
  0x27   : > { %s1031_s28 = sshll.u32 %s1734_s24, 2 }
  0x28   : > { %s1480_s14 = scalar_lea.vmem %s1715_s5, %s1031_s28 }
  0x2a   : > { %v1368_v0 = vmov 0.0  }
  0x2b   : > { %307 = vst [vmem:[#allocation6] sm:$0xff] %v1368_v0 }
  0x2c PF: > { %p1032_p3 = scmp.ne.s32.totalorder %s1348_s0, 0 }
  0x2e   : > { %310 = sbr.rel (%p1032_p3) target bundleno = 60 (0x3c), region = 44 }
  0x33   : > { %vm311_vm0 = vcmask 15360   ;;  %v1369_v1 = vmov 0.0  }
  0x34   : > { %312 = vst.msk [vmem:[#allocation2] sm:$0xff] %vm311_vm0, %v1369_v1  ;;  %313 = vst.msk [vmem:[#allocation2 + $0x8] sm:$0xff] %vm311_vm0, %v1369_v1 }
  0x35   : > { %314 = vst.msk [vmem:[#allocation2 + $0x10] sm:$0xff] %vm311_vm0, %v1369_v1  ;;  %315 = vst.msk [vmem:[#allocation2 + $0x18] sm:$0xff] %vm311_vm0, %v1369_v1 }
  0x36   : > { %316 = vst.msk [vmem:[#allocation2 + $0x20] sm:$0xff] %vm311_vm0, %v1369_v1  ;;  %317 = vst.msk [vmem:[#allocation2 + $0x28] sm:$0xff] %vm311_vm0, %v1369_v1 }
  0x37   : > { %318 = vst.msk [vmem:[#allocation2 + $0x30] sm:$0xff] %vm311_vm0, %v1369_v1  ;;  %319 = vst.msk [vmem:[#allocation2 + $0x38] sm:$0xff] %vm311_vm0, %v1369_v1 }
  0x38   : > { %320 = vst.msk [vmem:[#allocation2 + $0x40] sm:$0xff] %vm311_vm0, %v1369_v1  ;;  %321 = vst.msk [vmem:[#allocation2 + $0x48] sm:$0xff] %vm311_vm0, %v1369_v1 }
  0x39   : > { %322 = vst.msk [vmem:[#allocation2 + $0x50] sm:$0xff] %vm311_vm0, %v1369_v1  ;;  %323 = vst.msk [vmem:[#allocation2 + $0x58] sm:$0xff] %vm311_vm0, %v1369_v1 }
  0x3a   : > { %324 = vst.msk [vmem:[#allocation2 + $0x60] sm:$0xff] %vm311_vm0, %v1369_v1  ;;  %325 = vst.msk [vmem:[#allocation2 + $0x68] sm:$0xff] %vm311_vm0, %v1369_v1 }
  0x3b   : > { %326 = vst.msk [vmem:[#allocation2 + $0x70] sm:$0xff] %vm311_vm0, %v1369_v1  ;;  %327 = vst.msk [vmem:[#allocation2 + $0x78] sm:$0xff] %vm311_vm0, %v1369_v1 }
  0x3c PF: > { %s328_s15 = sld [smem:[#allocation5 + %s1352_s29]] }
  0x42   : > { %p1033_p4 = scmp.ge.s32.totalorder %s1348_s0, %s328_s15 }
  0x43   : > { %s1034_s17 = sshll.u32 (!%p1033_p4), %s1352_s29, 7 }
  0x44   : > { %332 = sbr.rel (%p1033_p4) target bundleno = 316 (0x13c), region = 48 }
  0x49   : > { %v1234_v2 = vld [vmem:[%s1480_s14 + $0x38] sm:$0xff]   ;;  %v337_v3 = vlaneseq  ;;  %v1235_v4 = vld [vmem:[%s1480_s14 + $0x30] sm:$0xff]   ;;  %v1236_v6 = vld [vmem:[%s1480_s14 + $0x28] sm:$0xff]   ;;  %v335_v7 = vstv %s1034_s17  ;;  %v1370_v18 = vmov 1.0|1.0  }
  0x4a   : > { %1109 = vmatprep.subr.bf16.mxu0 %v1234_v2  ;;  %1161 = vmatprep.subr.bf16.mxu1 %v1234_v2  ;;  %v1237_v9 = vld [vmem:[%s1480_s14 + $0x20] sm:$0xff]   ;;  %v1238_v16 = vld [vmem:[%s1480_s14 + $0x18] sm:$0xff]   ;;  %v1239_v17 = vld [vmem:[%s1480_s14 + $0x10] sm:$0xff]  }
  0x4b   : > { %1110 = vmatpush3.bf16.msra.mxu0 %v1234_v2  ;;  %1169 = vmatpush3.bf16.msra.mxu1 %v1234_v2  ;;  %v1504_v5 = vshrl.u32 %v337_v3, 7  ;;  %v333_v10 = vld [vmem:[%s284_s27] sm:$0x1]  ;;  %v1240_v19 = vld [vmem:[%s1480_s14 + $0x8] sm:$0xff]   ;;  %v416_v33 = vld [vmem:[#allocation2 + $0x10] sm:$0xff] }
  0x4c   : > { %1111 = vmatprep.subr.bf16.mxu0 %v1235_v4  ;;  %1162 = vmatprep.subr.bf16.mxu1 %v1235_v4  ;;  %v336_v11 = vsub.s32 %v333_v10, %v335_v7  ;;  %v1241_v24 = vld [vmem:[%s1480_s14] sm:$0xff]   ;;  %v424_v34 = vld [vmem:[#allocation2 + $0x50] sm:$0xff]  ;;  %v417_v43 = vld [vmem:[#allocation2 + $0x18] sm:$0xff] }
  0x4d   : > { %v356_v8 = vsub.s32 0, %v1504_v5  ;;  %v339_v12 = vadd.s32 8, %v1504_v5  ;;  %v346_v13 = vadd.s32 64, %v1504_v5  ;;  %v347_v14 = vadd.s32 72, %v1504_v5  ;;  %v414_v37 = vld [vmem:[#allocation2] sm:$0xff]  ;;  %v425_v44 = vld [vmem:[#allocation2 + $0x58] sm:$0xff] }
  0x4e   : > { %v340_v20 = vadd.s32 16, %v1504_v5  ;;  %v341_v21 = vadd.s32 24, %v1504_v5  ;;  %v348_v22 = vadd.s32 80, %v1504_v5  ;;  %v349_v23 = vadd.s32 88, %v1504_v5  ;;  %v422_v38 = vld [vmem:[#allocation2 + $0x40] sm:$0xff]  ;;  %v415_v49 = vld [vmem:[#allocation2 + $0x8] sm:$0xff] }
  0x4f   : > { %1112 = vmatpush3.bf16.msra.mxu0 %v1235_v4  ;;  %1170 = vmatpush3.bf16.msra.mxu1 %v1235_v4  ;;  %v1517_v15 = vrot.slane %v336_v11, %v356_v8  ;;  %v342_v25 = vadd.s32 32, %v1504_v5  ;;  %v343_v26 = vadd.s32 40, %v1504_v5  ;;  %v350_v27 = vadd.s32 96, %v1504_v5  ;;  %v423_v50 = vld [vmem:[#allocation2 + $0x48] sm:$0xff]  ;;  %v420_v55 = vld [vmem:[#allocation2 + $0x30] sm:$0xff]  ;;  %v418_v61 = vld [vmem:[#allocation2 + $0x20] sm:$0xff] }
  0x50   : > { %1113 = vmatprep.subr.bf16.mxu0 %v1236_v6  ;;  %1163 = vmatprep.subr.bf16.mxu1 %v1236_v6  ;;  %v351_v28 = vadd.s32 104, %v1504_v5  ;;  %v344_v29 = vadd.s32 48, %v1504_v5  ;;  %v345_v30 = vadd.s32 56, %v1504_v5  ;;  %v352_v31 = vadd.s32 112, %v1504_v5  ;;  %v428_v56 = vld [vmem:[#allocation2 + $0x70] sm:$0xff]  ;;  %v426_v62 = vld [vmem:[#allocation2 + $0x60] sm:$0xff] }
  0x51   : > { %vm358_vm1 = vcmp.eq.s32.totalorder %v1504_v5, %v1517_v15  ;;  %vm359_vm2 = vcmp.eq.s32.totalorder %v339_v12, %v1517_v15  ;;  %vm366_vm3 = vcmp.eq.s32.totalorder %v346_v13, %v1517_v15  ;;  %vm367_vm4 = vcmp.eq.s32.totalorder %v347_v14, %v1517_v15  ;;  %v421_v3 = vld [vmem:[#allocation2 + $0x38] sm:$0xff]  ;;  %v427_v10 = vld [vmem:[#allocation2 + $0x68] sm:$0xff] }
  0x52   : > { %vm1059_vm5 = vmpackc.low %vm359_vm2, %vm358_vm1  ;;  %vm360_vm7 = vcmp.eq.s32.totalorder %v340_v20, %v1517_v15  ;;  %vm361_vm8 = vcmp.eq.s32.totalorder %v341_v21, %v1517_v15  ;;  %vm368_vm9 = vcmp.eq.s32.totalorder %v348_v22, %v1517_v15  ;;  %vm369_vm10 = vcmp.eq.s32.totalorder %v349_v23, %v1517_v15  ;;  %v429_v4 = vld [vmem:[#allocation2 + $0x78] sm:$0xff] }
  0x53   : > { %1114 = vmatpush3.bf16.msra.mxu0 %v1236_v6  ;;  %1171 = vmatpush3.bf16.msra.mxu1 %v1236_v6  ;;  %vm1067_vm6 = vmpackc.low %vm367_vm4, %vm366_vm3  ;;  %vm362_vm11 = vcmp.eq.s32.totalorder %v342_v25, %v1517_v15  ;;  %vm363_vm12 = vcmp.eq.s32.totalorder %v343_v26, %v1517_v15  ;;  %vm370_vm14 = vcmp.eq.s32.totalorder %v350_v27, %v1517_v15  ;;  %v353_v32 = vadd.s32 120, %v1504_v5 }
  0x54   : > { %1115 = vmatprep.subr.bf16.mxu0 %v1237_v9  ;;  %1164 = vmatprep.subr.bf16.mxu1 %v1237_v9  ;;  %vm1061_vm13 = vmpackc.low %vm361_vm8, %vm360_vm7  ;;  %vm371_vm15 = vcmp.eq.s32.totalorder %v351_v28, %v1517_v15  ;;  %vm364_vm3 = vcmp.eq.s32.totalorder %v344_v29, %v1517_v15  ;;  %vm365_vm4 = vcmp.eq.s32.totalorder %v345_v30, %v1517_v15 }
  0x55   : > { %1125 = vmatprep.mubr.msk.bf16.mxu0 %vm1059_vm5, %v1370_v18  ;;  %1133 = vmatprep.mubr.msk.bf16.mxu1 %vm1067_vm6, %v1370_v18  ;;  %vm1069_vm0 = vmpackc.low %vm369_vm10, %vm368_vm9  ;;  %vm372_vm5 = vcmp.eq.s32.totalorder %v352_v31, %v1517_v15  ;;  %vm373_vm6 = vcmp.eq.s32.totalorder %v353_v32, %v1517_v15  ;;  %vm607_vm9 = vcmask 15360  }
  0x56   : > { %vm1063_vm1 = vmpackc.low %vm363_vm12, %vm362_vm11 }
  0x57   : > { %1116 = vmatpush3.bf16.msra.mxu0 %v1237_v9  ;;  %1172 = vmatpush3.bf16.msra.mxu1 %v1237_v9  ;;  %vm1071_vm2 = vmpackc.low %vm371_vm15, %vm370_vm14  ;;  %v419_v9 = vld [vmem:[#allocation2 + $0x28] sm:$0xff] }
  0x58   : > { %1117 = vmatprep.subr.bf16.mxu0 %v1238_v16  ;;  %1165 = vmatprep.subr.bf16.mxu1 %v1238_v16  ;;  %vm1065_vm7 = vmpackc.low %vm365_vm4, %vm364_vm3 }
  0x59   : > { %vm1073_vm8 = vmpackc.low %vm373_vm6, %vm372_vm5 }
  0x5b   : > { %1118 = vmatpush3.bf16.msra.mxu0 %v1238_v16  ;;  %1173 = vmatpush3.bf16.msra.mxu1 %v1238_v16 }
  0x5c   : > { %1119 = vmatprep.subr.bf16.mxu0 %v1239_v17  ;;  %1166 = vmatprep.subr.bf16.mxu1 %v1239_v17 }
  0x5f   : > { %1120 = vmatpush3.bf16.msra.mxu0 %v1239_v17  ;;  %1174 = vmatpush3.bf16.msra.mxu1 %v1239_v17 }
  0x60   : > { %1121 = vmatprep.subr.bf16.mxu0 %v1240_v19  ;;  %1167 = vmatprep.subr.bf16.mxu1 %v1240_v19 }
  0x63   : > { %1122 = vmatpush3.bf16.msra.mxu0 %v1240_v19  ;;  %1175 = vmatpush3.bf16.msra.mxu1 %v1240_v19 }
  0x64   : > { %1123 = vmatprep.subr.bf16.mxu0 %v1241_v24  ;;  %1168 = vmatprep.subr.bf16.mxu1 %v1241_v24 }
  0x67   : > { %1124 = vmatpush3.bf16.msra.mxu0 %v1241_v24  ;;  %1176 = vmatpush3.bf16.msra.mxu1 %v1241_v24 }
  0x6a   : > { %1126 = vmatmul.mubr.msk.bf16.vlgmr.msra.gmra.mxu0 %vm1061_vm13, %v1370_v18  ;;  %1134 = vmatmul.mubr.msk.bf16.vlgmr.msra.gmra.mxu1 %vm1069_vm0, %v1370_v18 }
  0x6b   : > { %1129 = vmatprep.mubr.msk.bf16.mxu0 %vm1063_vm1, %v1370_v18  ;;  %1137 = vmatprep.mubr.msk.bf16.mxu1 %vm1071_vm2, %v1370_v18 }
  0x72   : > { %1130 = vmatmul.mubr.msk.bf16.gmra.mxu0 %vm1065_vm7, %v1370_v18  ;;  %1138 = vmatmul.mubr.msk.bf16.gmra.mxu1 %vm1073_vm8, %v1370_v18 }
 0x12a   : > { %v1127_v35 = vpop.f32.mrf.mxu0  ;;  %v1135_v36 = vpop.f32.mrf.mxu1 }
 0x12b   : > { %v593_v39 = vadd.f32 %v1127_v35, %v416_v33  ;;  %v601_v40 = vadd.f32 %v1135_v36, %v424_v34 }
 0x12c   : > { %v528_v41 = vpop.f32.mrf.mxu0  ;;  %v560_v42 = vpop.f32.mrf.mxu1 }
 0x12d   : > { %610 = vst.msk [vmem:[#allocation2 + $0x10] sm:$0xff] %vm607_vm9, %v593_v39  ;;  %618 = vst.msk [vmem:[#allocation2 + $0x50] sm:$0xff] %vm607_vm9, %v601_v40  ;;  %v591_v45 = vadd.f32 %v528_v41, %v414_v37  ;;  %v599_v46 = vadd.f32 %v560_v42, %v422_v38 }
 0x12e   : > { %v1128_v47 = vpop.f32.mrf.mxu0  ;;  %v1136_v48 = vpop.f32.mrf.mxu1 }
 0x12f   : > { %608 = vst.msk [vmem:[#allocation2] sm:$0xff] %vm607_vm9, %v591_v45  ;;  %616 = vst.msk [vmem:[#allocation2 + $0x40] sm:$0xff] %vm607_vm9, %v599_v46  ;;  %v594_v51 = vadd.f32 %v1128_v47, %v417_v43  ;;  %v602_v52 = vadd.f32 %v1136_v48, %v425_v44 }
 0x130   : > { %v531_v53 = vpop.f32.mrf.mxu0  ;;  %v563_v54 = vpop.f32.mrf.mxu1 }
 0x131   : > { %611 = vst.msk [vmem:[#allocation2 + $0x18] sm:$0xff] %vm607_vm9, %v594_v51  ;;  %619 = vst.msk [vmem:[#allocation2 + $0x58] sm:$0xff] %vm607_vm9, %v602_v52  ;;  %v592_v57 = vadd.f32 %v531_v53, %v415_v49  ;;  %v600_v58 = vadd.f32 %v563_v54, %v423_v50 }
 0x132   : > { %v1131_v59 = vpop.f32.mrf.mxu0  ;;  %v1139_v60 = vpop.f32.mrf.mxu1 }
 0x133   : > { %609 = vst.msk [vmem:[#allocation2 + $0x8] sm:$0xff] %vm607_vm9, %v592_v57  ;;  %617 = vst.msk [vmem:[#allocation2 + $0x48] sm:$0xff] %vm607_vm9, %v600_v58  ;;  %v597_v63 = vadd.f32 %v1131_v59, %v420_v55  ;;  %v605_v0 = vadd.f32 %v1139_v60, %v428_v56 }
 0x134   : > { %v544_v1 = vpop.f32.mrf.mxu0  ;;  %v576_v2 = vpop.f32.mrf.mxu1 }
 0x135   : > { %614 = vst.msk [vmem:[#allocation2 + $0x30] sm:$0xff] %vm607_vm9, %v597_v63  ;;  %622 = vst.msk [vmem:[#allocation2 + $0x70] sm:$0xff] %vm607_vm9, %v605_v0  ;;  %v595_v5 = vadd.f32 %v544_v1, %v418_v61  ;;  %v603_v6 = vadd.f32 %v576_v2, %v426_v62 }
 0x136   : > { %v1132_v7 = vpop.f32.mrf.mxu0  ;;  %v1140_v8 = vpop.f32.mrf.mxu1 }
 0x137   : > { %612 = vst.msk [vmem:[#allocation2 + $0x20] sm:$0xff] %vm607_vm9, %v595_v5  ;;  %620 = vst.msk [vmem:[#allocation2 + $0x60] sm:$0xff] %vm607_vm9, %v603_v6  ;;  %v598_v11 = vadd.f32 %v1132_v7, %v421_v3  ;;  %v606_v12 = vadd.f32 %v1140_v8, %v429_v4 }
 0x138   : > { %v547_v13 = vpop.f32.mrf.mxu0  ;;  %v579_v14 = vpop.f32.mrf.mxu1 }
 0x139   : > { %615 = vst.msk [vmem:[#allocation2 + $0x38] sm:$0xff] %vm607_vm9, %v598_v11  ;;  %623 = vst.msk [vmem:[#allocation2 + $0x78] sm:$0xff] %vm607_vm9, %v606_v12  ;;  %v596_v15 = vadd.f32 %v547_v13, %v419_v9  ;;  %v604_v16 = vadd.f32 %v579_v14, %v427_v10 }
 0x13b   : > { %613 = vst.msk [vmem:[#allocation2 + $0x28] sm:$0xff] %vm607_vm9, %v596_v15  ;;  %621 = vst.msk [vmem:[#allocation2 + $0x68] sm:$0xff] %vm607_vm9, %v604_v16 }
 0x13c PF: > { %p1075_p5 = scmp.ne.s32.totalorder %s1348_s0, 1 }
 0x13d   : > { %s1372_s0 = smov (!%p1075_p5), 127  }
 0x13e   : > { %627 = sbr.rel (%p1075_p5) target bundleno = 819 (0x333), region = 52 }
 0x143   : > { %v1569_v17 = vld [vmem:[#allocation2 + $0x70] sm:$0xff]  ;;  %v1571_v18 = vld [vmem:[#allocation2 + $0x60] sm:$0xff]  ;;  %v1573_v19 = vld [vmem:[#allocation2 + $0x78] sm:$0xff]  ;;  %v1371_v31 = vmov 0   ;;  %v1373_v8 = vmov 0.0   ;;  %vm1374_vm10 = vmmov 0  }
 0x144   : > { %v658_v20 = vmax.f32 %v1569_v17, 1.0  ;;  %v656_v21 = vmax.f32 %v1571_v18, 1.0  ;;  %v659_v22 = vmax.f32 %v1573_v19, 1.0  ;;  %v1578_v23 = vld [vmem:[#allocation2 + $0x68] sm:$0xff]  ;;  %v1581_v25 = vld [vmem:[#allocation2 + $0x50] sm:$0xff]  ;;  %v1583_v26 = vld [vmem:[#allocation2 + $0x58] sm:$0xff]  ;;  %1242 = vset.pattern.permute.xlu0 %v1371_v31  ;;  %1243 = vset.pattern.permute.xlu1 %v1371_v31 }
 0x145   : > { %v657_v24 = vmax.f32 %v1578_v23, 1.0  ;;  %v654_v27 = vmax.f32 %v1581_v25, 1.0  ;;  %v655_v28 = vmax.f32 %v1583_v26, 1.0  ;;  %v1587_v29 = vld [vmem:[#allocation2 + $0x40] sm:$0xff]  ;;  %v1589_v30 = vld [vmem:[#allocation2 + $0x48] sm:$0xff]  ;;  %v1593_v34 = vld [vmem:[#allocation2 + $0x30] sm:$0xff]  ;;  %1141 = vmatprep.subr.bf16.mxu0 %v1373_v8  ;;  %1157 = vmatprep.mubr.msk.bf16.mxu0 %vm1374_vm10, %v1373_v8 }
 0x146   : > { %1244 = vrcp.f32 %v658_v20  ;;  %v652_v32 = vmax.f32 %v1587_v29, 1.0  ;;  %v653_v33 = vmax.f32 %v1589_v30, 1.0  ;;  %v1595_v35 = vld [vmem:[#allocation2 + $0x38] sm:$0xff]  ;;  %v650_v36 = vmax.f32 %v1593_v34, 1.0  ;;  %v1599_v38 = vld [vmem:[#allocation2 + $0x20] sm:$0xff]  ;;  %v1601_v39 = vld [vmem:[#allocation2 + $0x28] sm:$0xff] }
 0x147   : > { %1246 = vrcp.f32 %v656_v21  ;;  %v651_v37 = vmax.f32 %v1595_v35, 1.0  ;;  %v648_v42 = vmax.f32 %v1599_v38, 1.0  ;;  %v649_v44 = vmax.f32 %v1601_v39, 1.0  ;;  %v1607_v45 = vld [vmem:[#allocation2 + $0x10] sm:$0xff]  ;;  %v1609_v47 = vld [vmem:[#allocation2 + $0x18] sm:$0xff]  ;;  %v1615_v51 = vld [vmem:[#allocation2] sm:$0xff] }
 0x148   : > { %1248 = vrcp.f32 %v659_v22  ;;  %v646_v48 = vmax.f32 %v1607_v45, 1.0  ;;  %v647_v50 = vmax.f32 %v1609_v47, 1.0  ;;  %v1617_v53 = vld [vmem:[#allocation2 + $0x8] sm:$0xff]  ;;  %v644_v54 = vmax.f32 %v1615_v51, 1.0 }
 0x149   : > { %1250 = vrcp.f32 %v657_v24  ;;  %v645_v56 = vmax.f32 %v1617_v53, 1.0 }
 0x14a   : > { %1252 = vrcp.f32 %v654_v27 }
 0x14b   : > { %1254 = vrcp.f32 %v655_v28 }
 0x14c   : > { %1256 = vrcp.f32 %v652_v32 }
 0x14d   : > { %1258 = vrcp.f32 %v653_v33 }
 0x14e   : > { %1260 = vrcp.f32 %v650_v36  ;;  %v770_v36 = vld [vmem:[%s1467_s22 + $0x70] sm:$0xff] }
 0x14f   : > { %1262 = vrcp.f32 %v651_v37  ;;  %v771_v37 = vld [vmem:[%s1467_s22 + $0x78] sm:$0xff] }
 0x150   : > { %1264 = vrcp.f32 %v648_v42  ;;  %v769_v42 = vld [vmem:[%s1467_s22 + $0x68] sm:$0xff] }
 0x151   : > { %1266 = vrcp.f32 %v649_v44 }
 0x152   : > { %1268 = vrcp.f32 %v646_v48 }
 0x153   : > { %v1245_v40 = vpop.eup %1244  ;;  %1270 = vrcp.f32 %v647_v50  ;;  %v766_v50 = vld [vmem:[%s1467_s22 + $0x50] sm:$0xff] }
 0x154   : > { %v1247_v41 = vpop.eup %1246  ;;  %720 = vrot.lane.b32.xlu0 %v1245_v40, %s1372_s0  ;;  %1272 = vrcp.f32 %v644_v54 }
 0x155   : > { %v1249_v43 = vpop.eup %1248  ;;  %716 = vrot.lane.b32.xlu1 %v1247_v41, %s1372_s0  ;;  %1274 = vrcp.f32 %v645_v56  ;;  %v765_v56 = vld [vmem:[%s1467_s22 + $0x48] sm:$0xff] }
 0x156   : > { %v1251_v46 = vpop.eup %1250 }
 0x157   : > { %v1253_v49 = vpop.eup %1252 }
 0x158   : > { %722 = vrot.lane.b32.xlu0 %v1249_v43, %s1372_s0  ;;  %v1255_v52 = vpop.eup %1254  ;;  %v768_v43 = vld [vmem:[%s1467_s22 + $0x60] sm:$0xff] }
 0x159   : > { %718 = vrot.lane.b32.xlu1 %v1251_v46, %s1372_s0  ;;  %v1257_v55 = vpop.eup %1256 }
 0x15a   : > { %v1259_v57 = vpop.eup %1258 }
 0x15b   : > { %v1261_v58 = vpop.eup %1260 }
 0x15c   : > { %712 = vrot.lane.b32.xlu0 %v1253_v49, %s1372_s0  ;;  %v1263_v59 = vpop.eup %1262  ;;  %v767_v49 = vld [vmem:[%s1467_s22 + $0x58] sm:$0xff] }
 0x15d   : > { %714 = vrot.lane.b32.xlu1 %v1255_v52, %s1372_s0  ;;  %v1265_v60 = vpop.eup %1264 }
 0x15e   : > { %v1267_v61 = vpop.eup %1266 }
 0x15f   : > { %v1269_v62 = vpop.eup %1268 }
 0x160   : > { %708 = vrot.lane.b32.xlu0 %v1257_v55, %s1372_s0  ;;  %v1271_v63 = vpop.eup %1270 }
 0x161   : > { %710 = vrot.lane.b32.xlu1 %v1259_v57, %s1372_s0  ;;  %v1273_v0 = vpop.eup %1272  ;;  %v764_v57 = vld [vmem:[%s1467_s22 + $0x40] sm:$0xff] }
 0x162   : > { %v1275_v1 = vpop.eup %1274 }
 0x164   : > { %704 = vrot.lane.b32.xlu0 %v1261_v58, %s1372_s0 }
 0x165   : > { %706 = vrot.lane.b32.xlu1 %v1263_v59, %s1372_s0 }
 0x168   : > { %700 = vrot.lane.b32.xlu0 %v1265_v60, %s1372_s0 }
 0x169   : > { %702 = vrot.lane.b32.xlu1 %v1267_v61, %s1372_s0 }
 0x16c   : > { %696 = vrot.lane.b32.xlu0 %v1269_v62, %s1372_s0 }
 0x16d   : > { %698 = vrot.lane.b32.xlu1 %v1271_v63, %s1372_s0  ;;  %v763_v63 = vld [vmem:[%s1467_s22 + $0x38] sm:$0xff] }
 0x170   : > { %692 = vrot.lane.b32.xlu0 %v1273_v0, %s1372_s0  ;;  %v762_v0 = vld [vmem:[%s1467_s22 + $0x30] sm:$0xff] }
 0x171   : > { %694 = vrot.lane.b32.xlu1 %v1275_v1, %s1372_s0 }
 0x1c6   : > { %v721_v2 = vpop.permute.xlu0 %720 }
 0x1c7   : > { %v754_v3 = vmul.f32 %v721_v2, %v1569_v17  ;;  %v717_v4 = vpop.permute.xlu1 %716 }
 0x1c8   : > { %v752_v11 = vmul.f32 %v717_v4, %v1571_v18 }
 0x1c9   : > { %844 = vperm.xlu0 %1242, %v754_v3  }
 0x1ca   : > { %v723_v5 = vpop.permute.xlu0 %722 }
 0x1cb   : > { %v755_v6 = vmul.f32 %v723_v5, %v1573_v19  ;;  %v719_v7 = vpop.permute.xlu1 %718 }
 0x1cc   : > { %v753_v9 = vmul.f32 %v719_v7, %v1578_v23  ;;  %v760_v7 = vld [vmem:[%s1467_s22 + $0x20] sm:$0xff] }
 0x1cd   : > { %849 = vperm.xlu1 %1243, %v755_v6   ;;  %v761_v6 = vld [vmem:[%s1467_s22 + $0x28] sm:$0xff] }
 0x1ce   : > { %839 = vperm.xlu0 %1242, %v753_v9   ;;  %v713_v10 = vpop.permute.xlu0 %712 }
 0x1cf   : > { %v715_v12 = vpop.permute.xlu1 %714  ;;  %v750_v14 = vmul.f32 %v713_v10, %v1581_v25 }
 0x1d0   : > { %v751_v13 = vmul.f32 %v715_v12, %v1583_v26 }
 0x1d1   : > { %834 = vperm.xlu1 %1243, %v752_v11  }
 0x1d2   : > { %829 = vperm.xlu0 %1242, %v751_v13   ;;  %v709_v15 = vpop.permute.xlu0 %708 }
 0x1d3   : > { %v711_v16 = vpop.permute.xlu1 %710  ;;  %v748_v19 = vmul.f32 %v709_v15, %v1587_v29  ;;  %v758_v15 = vld [vmem:[%s1467_s22 + $0x10] sm:$0xff] }
 0x1d4   : > { %v749_v17 = vmul.f32 %v711_v16, %v1589_v30  ;;  %v876_v16 = vlaneseq }
 0x1d5   : > { %824 = vperm.xlu1 %1243, %v750_v14   ;;  %v759_v14 = vld [vmem:[%s1467_s22 + $0x18] sm:$0xff] }
 0x1d6   : > { %819 = vperm.xlu0 %1242, %v749_v17   ;;  %v705_v20 = vpop.permute.xlu0 %704 }
 0x1d7   : > { %v707_v21 = vpop.permute.xlu1 %706  ;;  %v746_v18 = vmul.f32 %v705_v20, %v1593_v34 }
 0x1d8   : > { %v747_v22 = vmul.f32 %v707_v21, %v1595_v35 }
 0x1d9   : > { %814 = vperm.xlu1 %1243, %v748_v19  }
 0x1da   : > { %809 = vperm.xlu0 %1242, %v747_v22   ;;  %v701_v23 = vpop.permute.xlu0 %700  ;;  %v757_v22 = vld [vmem:[%s1467_s22 + $0x8] sm:$0xff] }
 0x1db   : > { %v703_v24 = vpop.permute.xlu1 %702  ;;  %v744_v26 = vmul.f32 %v701_v23, %v1599_v38  ;;  %v756_v23 = vld [vmem:[%s1467_s22] sm:$0xff] }
 0x1dc   : > { %v745_v25 = vmul.f32 %v703_v24, %v1601_v39  ;;  %v877_v24 = vshrl.u32 %v876_v16, 7 }
 0x1dd   : > { %804 = vperm.xlu1 %1243, %v746_v18  }
 0x1de   : > { %799 = vperm.xlu0 %1242, %v745_v25   ;;  %v697_v27 = vpop.permute.xlu0 %696 }
 0x1df   : > { %v699_v28 = vpop.permute.xlu1 %698  ;;  %v742_v30 = vmul.f32 %v697_v27, %v1607_v45 }
 0x1e0   : > { %v743_v29 = vmul.f32 %v699_v28, %v1609_v47 }
 0x1e1   : > { %794 = vperm.xlu1 %1243, %v744_v26   ;;  %v1076_v26 = vld [vmem:[%s278_s16] ss:$0 sm:$0xff] }
 0x1e2   : > { %789 = vperm.xlu0 %1242, %v743_v29   ;;  %v693_v31 = vpop.permute.xlu0 %692  ;;  %vm883_vm11 = vcmp.eq.s32.totalorder %v877_v24, %v1076_v26 }
 0x1e3   : > { %v695_v32 = vpop.permute.xlu1 %694  ;;  %v740_v34 = vmul.f32 %v693_v31, %v1615_v51  ;;  %vm1078_vm12 = vmpackc.low %vm883_vm11, %vm883_vm11  ;;  %v1375_v31 = vmov 1.0|1.0  }
 0x1e4   : > { %v741_v33 = vmul.f32 %v695_v32, %v1617_v53  ;;  %v887_v32 = vld [vmem:[#allocation6] sm:$0xff] }
 0x1e5   : > { %784 = vperm.xlu1 %1243, %v742_v30  }
 0x1e6   : > { %779 = vperm.xlu0 %1242, %v741_v33  }
 0x1e9   : > { %774 = vperm.xlu1 %1243, %v740_v34  }
 0x244   : > { %v845_v35 = vpop.permute.xlu0 %844 }
 0x245   : > { %v866_v39 = vmul.f32 %v845_v35, %v770_v36 }
 0x248   : > { %v850_v38 = vpop.permute.xlu1 %849 }
 0x249   : > { %v867_v40 = vmul.f32 %v850_v38, %v771_v37  ;;  %v840_v41 = vpop.permute.xlu0 %839 }
 0x24a   : > { %v865_v46 = vmul.f32 %v840_v41, %v769_v42 }
 0x24b   : > { %v875_v44 = vpack.c.bf16 %v867_v40, %v866_v39 }
 0x24c   : > { %v835_v45 = vpop.permute.xlu1 %834 }
 0x24d   : > { %v864_v47 = vmul.f32 %v835_v45, %v768_v43  ;;  %v830_v48 = vpop.permute.xlu0 %829  ;;  %1142 = vmatpush3.bf16.msra.mxu0 %v875_v44 }
 0x24e   : > { %1143 = vmatprep.subr.bf16.mxu0 %v1373_v8  ;;  %v863_v53 = vmul.f32 %v830_v48, %v767_v49 }
 0x24f   : > { %v874_v51 = vpack.c.bf16 %v865_v46, %v864_v47 }
 0x250   : > { %v825_v52 = vpop.permute.xlu1 %824 }
 0x251   : > { %v862_v54 = vmul.f32 %v825_v52, %v766_v50  ;;  %v820_v55 = vpop.permute.xlu0 %819  ;;  %1144 = vmatpush3.bf16.msra.mxu0 %v874_v51 }
 0x252   : > { %1145 = vmatprep.subr.bf16.mxu0 %v1373_v8  ;;  %v861_v60 = vmul.f32 %v820_v55, %v765_v56 }
 0x253   : > { %v873_v58 = vpack.c.bf16 %v863_v53, %v862_v54 }
 0x254   : > { %v815_v59 = vpop.permute.xlu1 %814 }
 0x255   : > { %v860_v61 = vmul.f32 %v815_v59, %v764_v57  ;;  %v810_v62 = vpop.permute.xlu0 %809  ;;  %1146 = vmatpush3.bf16.msra.mxu0 %v873_v58 }
 0x256   : > { %1147 = vmatprep.subr.bf16.mxu0 %v1373_v8  ;;  %v859_v3 = vmul.f32 %v810_v62, %v763_v63 }
 0x257   : > { %v872_v1 = vpack.c.bf16 %v861_v60, %v860_v61 }
 0x258   : > { %v805_v2 = vpop.permute.xlu1 %804 }
 0x259   : > { %v858_v4 = vmul.f32 %v805_v2, %v762_v0  ;;  %v800_v5 = vpop.permute.xlu0 %799  ;;  %1148 = vmatpush3.bf16.msra.mxu0 %v872_v1 }
 0x25a   : > { %1149 = vmatprep.subr.bf16.mxu0 %v1373_v8  ;;  %v857_v11 = vmul.f32 %v800_v5, %v761_v6 }
 0x25b   : > { %v871_v9 = vpack.c.bf16 %v859_v3, %v858_v4 }
 0x25c   : > { %v795_v10 = vpop.permute.xlu1 %794 }
 0x25d   : > { %v856_v12 = vmul.f32 %v795_v10, %v760_v7  ;;  %v790_v13 = vpop.permute.xlu0 %789  ;;  %1150 = vmatpush3.bf16.msra.mxu0 %v871_v9 }
 0x25e   : > { %1151 = vmatprep.subr.bf16.mxu0 %v1373_v8  ;;  %v855_v20 = vmul.f32 %v790_v13, %v759_v14 }
 0x25f   : > { %v870_v17 = vpack.c.bf16 %v857_v11, %v856_v12 }
 0x260   : > { %v785_v19 = vpop.permute.xlu1 %784 }
 0x261   : > { %v854_v21 = vmul.f32 %v785_v19, %v758_v15  ;;  %1152 = vmatpush3.bf16.msra.mxu0 %v870_v17  ;;  %v780_v18 = vpop.permute.xlu0 %779 }
 0x262   : > { %1153 = vmatprep.subr.bf16.mxu0 %v1373_v8  ;;  %v853_v28 = vmul.f32 %v780_v18, %v757_v22 }
 0x263   : > { %v869_v25 = vpack.c.bf16 %v855_v20, %v854_v21 }
 0x264   : > { %v775_v27 = vpop.permute.xlu1 %774 }
 0x265   : > { %v852_v29 = vmul.f32 %v775_v27, %v756_v23  ;;  %1154 = vmatpush3.bf16.msra.mxu0 %v869_v25 }
 0x266   : > { %1155 = vmatprep.subr.bf16.mxu0 %v1373_v8 }
 0x267   : > { %v868_v30 = vpack.c.bf16 %v853_v28, %v852_v29 }
 0x269   : > { %1156 = vmatpush3.bf16.msra.mxu0 %v868_v30 }
 0x26c   : > { %1158 = vmatmul.mubr.msk.bf16.vlgmr.msra.gmra.mxu0 %vm1078_vm12, %v1375_v31 }
 0x32c   : > { %v922_v33 = vpop.f32.mrf.mxu0 }
 0x32d   : > { %v928_v34 = vadd.f32 %v922_v33, %v887_v32 }
 0x32e   : > { %v1159_v35 = vpop.f32.mrf.mxu0 }
 0x32f   : > { %929 = vst [vmem:[#allocation6] sm:$0xff] %v928_v34 }
 0x330   : > { %v925_v36 = vpop.f32.mrf.mxu0 }
 0x332   : > { %v1160_v37 = vpop.f32.mrf.mxu0 }
 0x333 PF: > { %p1681_p6 = scmp.eq.s32.totalorder %s1018_s1, 3  ;;  %s1376_s16 = smov [#allocation6]  }
 0x334   : > { %s937_s21 = sshll.u32 %s1376_s16, 4  ;;  %s938_s21 = int_to_ptr.vmem [resolvable:$true] %s937_s21 }
 0x335   : > { %s1296_s22 = scalar_lea.vmem %s938_s21, 128  ;;  %p1303_p10 = scmp.lt.s32.totalorder %s938_s21, %s938_s21 }
 0x336   : > { %p1297_p7 = scmp.ne.s32.totalorder %s938_s21, %s1296_s22  ;;  %p1304_p11 = scmp.lt.s32.totalorder %s1296_s22, %s1296_s22 }
 0x338   : > { %p1298_p8 = pnand %p1297_p7, %p1681_p6  ;;  %p1305_p12 = por %p1304_p11, %p1303_p10 }
 0x33a   : > { %p1299_p9 = pneg %p1298_p8 }
 0x33c   : > { %p1306_p13 = pnand %p1305_p12, %p1299_p9 }
 0x33e   : > { %1309 = shalt.err (!%p1306_p13)
}
 0x33f   : > { %1178 = dma.vmem_to_hbm [thread:$0]  (%p1681_p6), %s938_s21, 128, %s1716_s6, [#allocation7]  }
 0x340   : > { %1343 = dma.done.wait (%p1681_p6), [#allocation7], 128  }
 0x341   : > { %1345 = vsyncadd (%p1681_p6), [#allocation7], 4294967168 }
 0x342 PF: > { %s25_s8 = sadd.s32 1, %s1364_s8   ;;  %s1719_s0 = smov %s1356_s30 }
 0x343   : > { %p22_p0 = scmp.ge.s32.totalorder %s25_s8, 6   ;;  %s1720_s29 = smov %s1360_s7 }
 0x344   : > { %s1721_s30 = smov %s1724_s9  ;;  %s1722_s7 = smov %s1728_s10 }
 0x345   :  { %24 = sbr.rel (!%p22_p0) target bundleno = 19 (0x13), region = 88 }
 0x34a   :  { %950 = vsyncpa [#allocation7], 1 }
 0x34b   :  { %952 = vsyncpa [#allocation7 + $0x1], 1 }

</bundles_post_ra>
